<compile_context>
chip_gen: v7x
topology: tpu7x:2x2x1
jax: 0.10.0
libtpu: 0.0.40
codegen_flags: <defaults>
</compile_context>

<pallas_src>
import jax
import jax.numpy as jnp
from jax import lax
from jax.experimental import pallas as pl
from jax.experimental.pallas import tpu as pltpu


def _round_up(a, m):
    return (a + m - 1) // m * m


def _bilstm_head_kernel(max_len_ref,                        # SMEM [nb] int32 (scalar prefetch)
                        xe_ref, len_ref,                    # [S,Bt,E] bf16, [Bt,1] int32
                        wih_b_ref, whh_b_ref, bias_b_ref,   # [E,4H] bf16, [H,4H] bf16, [1,4H] f32
                        wih_f_ref, bias_f_ref,              # [E,4H] bf16, [1,4H] f32
                        out_ref,                            # [Bt,2H] f32
                        h_ref, c_ref):                      # VMEM scratch [Bt,H] f32
    b = pl.program_id(0)
    H = h_ref.shape[1]

    h_ref[...] = jnp.zeros_like(h_ref)
    c_ref[...] = jnp.zeros_like(c_ref)

    lens = len_ref[...]                       # [Bt, 1] int32
    ml = max_len_ref[b]                       # longest valid length in this batch tile

    # ---- backward-direction LSTM: reverse scan over the valid prefix only ----
    def step(s, carry):
        t = ml - 1 - s                        # true time index, ml-1 .. 0
        x_t = xe_ref[t]                       # [Bt, E] bf16
        gates = (jnp.dot(x_t, wih_b_ref[...], preferred_element_type=jnp.float32)
                 + jnp.dot(h_ref[...].astype(jnp.bfloat16), whh_b_ref[...],
                           preferred_element_type=jnp.float32)
                 + bias_b_ref[...])           # [Bt, 4H] f32
        i_g = jax.nn.sigmoid(gates[:, 0 * H:1 * H])
        f_g = jax.nn.sigmoid(gates[:, 1 * H:2 * H])
        g_g = jnp.tanh(gates[:, 2 * H:3 * H])
        o_g = jax.nn.sigmoid(gates[:, 3 * H:4 * H])
        c_new = f_g * c_ref[...] + i_g * g_g
        h_new = o_g * jnp.tanh(c_new)

        valid = t < lens                      # [Bt, 1] packed-sequence mask
        c_ref[...] = jnp.where(valid, c_new, c_ref[...])
        h_ref[...] = jnp.where(valid, h_new, h_ref[...])
        return carry

    lax.fori_loop(0, ml, step, 0)

    # ---- forward-direction cell at t=0 with h0 = c0 = 0 (W_hh term vanishes) ----
    gates_f = (jnp.dot(xe_ref[0], wih_f_ref[...], preferred_element_type=jnp.float32)
               + bias_f_ref[...])
    i_f = jax.nn.sigmoid(gates_f[:, 0 * H:1 * H])
    g_f = jnp.tanh(gates_f[:, 2 * H:3 * H])
    o_f = jax.nn.sigmoid(gates_f[:, 3 * H:4 * H])

    out_ref[:, 0 * H:1 * H] = o_f * jnp.tanh(i_f * g_f)   # forward hidden at t=0
    out_ref[:, 1 * H:2 * H] = h_ref[...]                  # backward hidden at t=0


def bilstm_forward(x, x_len, emb_tbl,
                   w_ih_f, w_hh_f, b_ih_f, b_hh_f,
                   w_ih_b, w_hh_b, b_ih_b, b_hh_b):
    """Equivalent of BiLSTM.forward(x, x_len) -> output_unpacked[:, 0, :]."""
    del w_hh_f  # h_0 == 0, so the forward recurrent term never reaches output[:, 0, :H]

    B, S = x.shape
    E = emb_tbl.shape[1]
    H = w_hh_b.shape[1]

    # ---- host-side plumbing: embedding gather, layout, dtypes, padding ----
    xe = jnp.take(emb_tbl, x.astype(jnp.int32), axis=0)            # [B, S, E]
    xe = jnp.transpose(xe, (1, 0, 2)).astype(jnp.bfloat16)         # [S, B, E] time-major

    lens = x_len.astype(jnp.int32).reshape(B, 1)                   # [B, 1]

    b_tile = min(128, _round_up(B, 8))
    B_pad = _round_up(B, b_tile)
    nb = B_pad // b_tile
    if B_pad != B:
        xe = jnp.pad(xe, ((0, 0), (0, B_pad - B), (0, 0)))
        lens = jnp.pad(lens, ((0, B_pad - B), (0, 0)))             # padded rows: len 0

    tile_max_len = jnp.max(lens.reshape(nb, b_tile), axis=1).astype(jnp.int32)  # [nb]

    wih_b_t = jnp.transpose(w_ih_b).astype(jnp.bfloat16)           # [E, 4H]
    whh_b_t = jnp.transpose(w_hh_b).astype(jnp.bfloat16)           # [H, 4H]
    bias_b = (b_ih_b + b_hh_b).reshape(1, 4 * H).astype(jnp.float32)
    wih_f_t = jnp.transpose(w_ih_f).astype(jnp.bfloat16)           # [E, 4H]
    bias_f = (b_ih_f + b_hh_f).reshape(1, 4 * H).astype(jnp.float32)

    grid_spec = pltpu.PrefetchScalarGridSpec(
        num_scalar_prefetch=1,
        grid=(nb,),
        in_specs=[
            pl.BlockSpec((S, b_tile, E), lambda b, ml: (0, b, 0)),   # xe (time-major)
            pl.BlockSpec((b_tile, 1),    lambda b, ml: (b, 0)),      # lengths
            pl.BlockSpec((E, 4 * H),     lambda b, ml: (0, 0)),      # W_ih bwd^T (resident)
            pl.BlockSpec((H, 4 * H),     lambda b, ml: (0, 0)),      # W_hh bwd^T (resident)
            pl.BlockSpec((1, 4 * H),     lambda b, ml: (0, 0)),      # bias bwd
            pl.BlockSpec((E, 4 * H),     lambda b, ml: (0, 0)),      # W_ih fwd^T (resident)
            pl.BlockSpec((1, 4 * H),     lambda b, ml: (0, 0)),      # bias fwd
        ],
        out_specs=pl.BlockSpec((b_tile, 2 * H), lambda b, ml: (b, 0)),
        scratch_shapes=[pltpu.VMEM((b_tile, H), jnp.float32),        # h (backward)
                        pltpu.VMEM((b_tile, H), jnp.float32)],       # c (backward)
    )

    out = pl.pallas_call(
        _bilstm_head_kernel,
        out_shape=jax.ShapeDtypeStruct((B_pad, 2 * H), jnp.float32),
        grid_spec=grid_spec,
        compiler_params=pltpu.CompilerParams(
            dimension_semantics=("parallel",),
        ),
    )(tile_max_len, xe, lens, wih_b_t, whh_b_t, bias_b, wih_f_t, bias_f)

    # [fwd_h(t=0) | bwd_h(t=0)]  ->  [B, 2H]
    return out[:B]


# ---------------------------- pure-JAX reference ----------------------------

def _lstm_cell_ref(x_t, h, c, w_ih, w_hh, b_ih, b_hh):
    g = x_t @ w_ih.T + h @ w_hh.T + b_ih + b_hh
    H = h.shape[1]
    i = jax.nn.sigmoid(g[:, 0 * H:1 * H])
    f = jax.nn.sigmoid(g[:, 1 * H:2 * H])
    gg = jnp.tanh(g[:, 2 * H:3 * H])
    o = jax.nn.sigmoid(g[:, 3 * H:4 * H])
    c2 = f * c + i * gg
    return o * jnp.tanh(c2), c2


def _reference(x, x_len, emb_tbl,
               w_ih_f, w_hh_f, b_ih_f, b_hh_f,
               w_ih_b, w_hh_b, b_ih_b, b_hh_b):
    B, S = x.shape
    H = w_hh_b.shape[1]
    xe = jnp.take(emb_tbl, x.astype(jnp.int32), axis=0)      # [B, S, E]
    z = jnp.zeros((B, H), jnp.float32)
    h_f, _ = _lstm_cell_ref(xe[:, 0], z, z, w_ih_f, w_hh_f, b_ih_f, b_hh_f)
    h_b, c_b = z, z
    for t in range(S - 1, -1, -1):                            # packed reverse scan
        h2, c2 = _lstm_cell_ref(xe[:, t], h_b, c_b, w_ih_b, w_hh_b, b_ih_b, b_hh_b)
        m = (t < x_len)[:, None]
        h_b = jnp.where(m, h2, h_b)
        c_b = jnp.where(m, c2, c_b)
    return jnp.concatenate([h_f, h_b], axis=-1)


if __name__ == "__main__":
    key = jax.random.PRNGKey(0)
    ks = jax.random.split(key, 12)

    # Small, lane-aligned shapes consistent with the module (vocab, seq, emb, hidden).
    B, S = 8, 8
    V, E, H = 64, 128, 128

    emb_tbl = jax.random.normal(ks[0], (V, E), dtype=jnp.float32)       # frozen "pretrained" table
    x = jax.random.randint(ks[1], (B, S), 0, V, dtype=jnp.int32)
    x_len = jax.random.randint(ks[2], (B,), 1, S + 1, dtype=jnp.int32)  # valid lengths in [1, S]

    lim = 1.0 / float(H) ** 0.5
    def u(k, shape):
        return jax.random.uniform(k, shape, jnp.float32, -lim, lim)

    # PyTorch-layout LSTM params: weight_ih [4H, E], weight_hh [4H, H], biases [4H]
    w_ih_f, w_hh_f = u(ks[3], (4 * H, E)), u(ks[4], (4 * H, H))
    b_ih_f, b_hh_f = u(ks[5], (4 * H,)), u(ks[6], (4 * H,))
    w_ih_b, w_hh_b = u(ks[7], (4 * H, E)), u(ks[8], (4 * H, H))
    b_ih_b, b_hh_b = u(ks[9], (4 * H,)), u(ks[10], (4 * H,))

    out = bilstm_forward(x, x_len, emb_tbl,
                         w_ih_f, w_hh_f, b_ih_f, b_hh_f,
                         w_ih_b, w_hh_b, b_ih_b, b_hh_b)
    out = jax.block_until_ready(out)

    ref = _reference(x, x_len, emb_tbl,
                     w_ih_f, w_hh_f, b_ih_f, b_hh_f,
                     w_ih_b, w_hh_b, b_ih_b, b_hh_b)

    assert out.shape == (B, 2 * H), out.shape
    # bf16 weights/activations vs f32 reference -> loose-ish tolerance
    assert jnp.allclose(out, ref, atol=2e-2, rtol=2e-2), float(jnp.max(jnp.abs(out - ref)))

    print("KERNEL_OK")
</pallas_src>

<mosaic_0001>
module attributes {stable_mosaic.version = 11 : i64} {
  func.func @_bilstm_head_kernel(%arg0: i32, %arg1: memref<1xi32, #tpu.memory_space<smem>>, %arg2: memref<8x8x128xbf16, #tpu.memory_space<vmem>>, %arg3: memref<8x1xi32, #tpu.memory_space<vmem>>, %arg4: memref<128x512xbf16, #tpu.memory_space<vmem>>, %arg5: memref<128x512xbf16, #tpu.memory_space<vmem>>, %arg6: memref<1x512xf32, #tpu.memory_space<vmem>>, %arg7: memref<128x512xbf16, #tpu.memory_space<vmem>>, %arg8: memref<1x512xf32, #tpu.memory_space<vmem>>, %arg9: memref<8x256xf32, #tpu.memory_space<vmem>>, %arg10: memref<8x128xf32, #tpu.memory_space<vmem>>, %arg11: memref<8x128xf32, #tpu.memory_space<vmem>>) attributes {dimension_semantics = [#tpu.dimension_semantics<parallel>], iteration_bounds = array<i64: 1>, scalar_prefetch = 1 : i64, scratch_operands = 2 : i64, tpu.core_type = #tpu.core_type<tc>, window_params = [{transform_indices = @transform_0, window_bounds = array<i64: 8, 8, 128>}, {transform_indices = @transform_1, window_bounds = array<i64: 8, 1>}, {pipeline_mode = #tpu.pipeline_mode<synchronous>, transform_indices = @transform_2, window_bounds = array<i64: 128, 512>}, {pipeline_mode = #tpu.pipeline_mode<synchronous>, transform_indices = @transform_3, window_bounds = array<i64: 128, 512>}, {pipeline_mode = #tpu.pipeline_mode<synchronous>, transform_indices = @transform_4, window_bounds = array<i64: 1, 512>}, {pipeline_mode = #tpu.pipeline_mode<synchronous>, transform_indices = @transform_5, window_bounds = array<i64: 128, 512>}, {pipeline_mode = #tpu.pipeline_mode<synchronous>, transform_indices = @transform_6, window_bounds = array<i64: 1, 512>}, {transform_indices = @transform_7, window_bounds = array<i64: 8, 256>}]} {
    %cst = arith.constant 0.000000e+00 : f32
    %0 = vector.broadcast %cst : f32 to vector<8x128xf32>
    %c0 = arith.constant 0 : index
    %c0_0 = arith.constant 0 : index
    %1 = vector.load %arg10[%c0, %c0_0] : memref<8x128xf32, #tpu.memory_space<vmem>>, vector<8x128xf32>
    tpu.vector_store %arg10[%c0, %c0_0], %0 {strides = array<i32>} : memref<8x128xf32, #tpu.memory_space<vmem>>, vector<8x128xf32>,
    %cst_1 = arith.constant 0.000000e+00 : f32
    %2 = vector.broadcast %cst_1 : f32 to vector<8x128xf32>
    %c0_2 = arith.constant 0 : index
    %c0_3 = arith.constant 0 : index
    %3 = vector.load %arg11[%c0_2, %c0_3] : memref<8x128xf32, #tpu.memory_space<vmem>>, vector<8x128xf32>
    tpu.vector_store %arg11[%c0_2, %c0_3], %2 {strides = array<i32>} : memref<8x128xf32, #tpu.memory_space<vmem>>, vector<8x128xf32>,
    %c0_4 = arith.constant 0 : index
    %c0_5 = arith.constant 0 : index
    %4 = vector.load %arg3[%c0_4, %c0_5] : memref<8x1xi32, #tpu.memory_space<vmem>>, vector<8x1xi32>
    %5 = arith.index_cast %arg0 : i32 to index
    %6 = memref.load %arg1[%5] : memref<1xi32, #tpu.memory_space<smem>>
    %c0_i32 = arith.constant 0 : i32
    %c0_i32_6 = arith.constant 0 : i32
    %7 = arith.subi %6, %c0_i32_6 : i32
    %8 = arith.addi %c0_i32_6, %7 : i32
    %c1_i32 = arith.constant 1 : i32
    scf.for %arg12 = %c0_i32_6 to %8 step %c1_i32  : i32 {
      %c1_i32_22 = arith.constant 1 : i32
      %36 = arith.subi %6, %c1_i32_22 : i32
      %37 = arith.subi %36, %arg12 : i32
      %38 = arith.index_cast %37 : i32 to index
      %c0_23 = arith.constant 0 : index
      %c0_24 = arith.constant 0 : index
      %39 = vector.load %arg2[%38, %c0_23, %c0_24] : memref<8x8x128xbf16, #tpu.memory_space<vmem>>, vector<1x8x128xbf16>
      %40 = vector.shape_cast %39 : vector<1x8x128xbf16> to vector<8x128xbf16>
      %c0_25 = arith.constant 0 : index
      %c0_26 = arith.constant 0 : index
      %41 = vector.load %arg4[%c0_25, %c0_26] : memref<128x512xbf16, #tpu.memory_space<vmem>>, vector<128x512xbf16>
      %cst_27 = arith.constant dense<0.000000e+00> : vector<8x512xf32>
      %42 = tpu.matmul %40, %41, %cst_27 {dimension_numbers = #tpu.dot_dimension_numbers<[1], [0], [0], [1], [0, 0, 1, 1], [], []>} : vector<8x128xbf16>, vector<128x512xbf16>, vector<8x512xf32> -> vector<8x512xf32>
      %c0_28 = arith.constant 0 : index
      %c0_29 = arith.constant 0 : index
      %43 = vector.load %arg10[%c0_28, %c0_29] : memref<8x128xf32, #tpu.memory_space<vmem>>, vector<8x128xf32>
      %44 = arith.truncf %43 : vector<8x128xf32> to vector<8x128xbf16>
      %c0_30 = arith.constant 0 : index
      %c0_31 = arith.constant 0 : index
      %45 = vector.load %arg5[%c0_30, %c0_31] : memref<128x512xbf16, #tpu.memory_space<vmem>>, vector<128x512xbf16>
      %cst_32 = arith.constant dense<0.000000e+00> : vector<8x512xf32>
      %46 = tpu.matmul %44, %45, %cst_32 {dimension_numbers = #tpu.dot_dimension_numbers<[1], [0], [0], [1], [0, 0, 1, 1], [], []>} : vector<8x128xbf16>, vector<128x512xbf16>, vector<8x512xf32> -> vector<8x512xf32>
      %47 = arith.addf %42, %46 : vector<8x512xf32>
      %c0_33 = arith.constant 0 : index
      %c0_34 = arith.constant 0 : index
      %48 = vector.load %arg6[%c0_33, %c0_34] : memref<1x512xf32, #tpu.memory_space<vmem>>, vector<1x512xf32>
      %49 = vector.broadcast %48 : vector<1x512xf32> to vector<8x512xf32>
      %50 = arith.addf %47, %49 : vector<8x512xf32>
      %51 = vector.extract_strided_slice %50 {offsets = [0, 0], sizes = [8, 128], strides = [1, 1]} : vector<8x512xf32> to vector<8x128xf32>
      %52 = arith.negf %51 : vector<8x128xf32>
      %53 = math.exp %52 : vector<8x128xf32>
      %cst_35 = arith.constant 1.000000e+00 : f32
      %54 = vector.broadcast %cst_35 : f32 to vector<8x128xf32>
      %55 = arith.addf %54, %53 : vector<8x128xf32>
      %56 = arith.divf %54, %55 : vector<8x128xf32>
      %57 = vector.extract_strided_slice %50 {offsets = [0, 128], sizes = [8, 128], strides = [1, 1]} : vector<8x512xf32> to vector<8x128xf32>
      %58 = arith.negf %57 : vector<8x128xf32>
      %59 = math.exp %58 : vector<8x128xf32>
      %cst_36 = arith.constant 1.000000e+00 : f32
      %60 = vector.broadcast %cst_36 : f32 to vector<8x128xf32>
      %61 = arith.addf %60, %59 : vector<8x128xf32>
      %62 = arith.divf %60, %61 : vector<8x128xf32>
      %63 = vector.extract_strided_slice %50 {offsets = [0, 256], sizes = [8, 128], strides = [1, 1]} : vector<8x512xf32> to vector<8x128xf32>
      %64 = math.tanh %63 : vector<8x128xf32>
      %65 = vector.extract_strided_slice %50 {offsets = [0, 384], sizes = [8, 128], strides = [1, 1]} : vector<8x512xf32> to vector<8x128xf32>
      %66 = arith.negf %65 : vector<8x128xf32>
      %67 = math.exp %66 : vector<8x128xf32>
      %cst_37 = arith.constant 1.000000e+00 : f32
      %68 = vector.broadcast %cst_37 : f32 to vector<8x128xf32>
      %69 = arith.addf %68, %67 : vector<8x128xf32>
      %70 = arith.divf %68, %69 : vector<8x128xf32>
      %c0_38 = arith.constant 0 : index
      %c0_39 = arith.constant 0 : index
      %71 = vector.load %arg11[%c0_38, %c0_39] : memref<8x128xf32, #tpu.memory_space<vmem>>, vector<8x128xf32>
      %72 = arith.mulf %62, %71 : vector<8x128xf32>
      %73 = arith.mulf %56, %64 : vector<8x128xf32>
      %74 = arith.addf %72, %73 : vector<8x128xf32>
      %75 = math.tanh %74 : vector<8x128xf32>
      %76 = arith.mulf %70, %75 : vector<8x128xf32>
      %77 = vector.broadcast %37 : i32 to vector<8x1xi32>
      %78 = arith.cmpi slt, %77, %4 : vector<8x1xi32>
      %c0_40 = arith.constant 0 : index
      %c0_41 = arith.constant 0 : index
      %79 = vector.load %arg11[%c0_40, %c0_41] : memref<8x128xf32, #tpu.memory_space<vmem>>, vector<8x128xf32>
      %80 = vector.shape_cast %78 : vector<8x1xi1> to vector<8x1xi1>
      %81 = vector.broadcast %80 : vector<8x1xi1> to vector<8x128xi1>
      %82 = arith.select %81, %74, %79 : vector<8x128xi1>, vector<8x128xf32>
      %c0_42 = arith.constant 0 : index
      %c0_43 = arith.constant 0 : index
      %83 = vector.load %arg11[%c0_42, %c0_43] : memref<8x128xf32, #tpu.memory_space<vmem>>, vector<8x128xf32>
      tpu.vector_store %arg11[%c0_42, %c0_43], %82 {strides = array<i32>} : memref<8x128xf32, #tpu.memory_space<vmem>>, vector<8x128xf32>,
      %c0_44 = arith.constant 0 : index
      %c0_45 = arith.constant 0 : index
      %84 = vector.load %arg10[%c0_44, %c0_45] : memref<8x128xf32, #tpu.memory_space<vmem>>, vector<8x128xf32>
      %85 = vector.shape_cast %78 : vector<8x1xi1> to vector<8x1xi1>
      %86 = vector.broadcast %85 : vector<8x1xi1> to vector<8x128xi1>
      %87 = arith.select %86, %76, %84 : vector<8x128xi1>, vector<8x128xf32>
      %c0_46 = arith.constant 0 : index
      %c0_47 = arith.constant 0 : index
      %88 = vector.load %arg10[%c0_46, %c0_47] : memref<8x128xf32, #tpu.memory_space<vmem>>, vector<8x128xf32>
      tpu.vector_store %arg10[%c0_46, %c0_47], %87 {strides = array<i32>} : memref<8x128xf32, #tpu.memory_space<vmem>>, vector<8x128xf32>,
    }
    %c0_7 = arith.constant 0 : index
    %c0_8 = arith.constant 0 : index
    %c0_9 = arith.constant 0 : index
    %9 = vector.load %arg2[%c0_7, %c0_8, %c0_9] : memref<8x8x128xbf16, #tpu.memory_space<vmem>>, vector<1x8x128xbf16>
    %10 = vector.shape_cast %9 : vector<1x8x128xbf16> to vector<8x128xbf16>
    %c0_10 = arith.constant 0 : index
    %c0_11 = arith.constant 0 : index
    %11 = vector.load %arg7[%c0_10, %c0_11] : memref<128x512xbf16, #tpu.memory_space<vmem>>, vector<128x512xbf16>
    %cst_12 = arith.constant dense<0.000000e+00> : vector<8x512xf32>
    %12 = tpu.matmul %10, %11, %cst_12 {dimension_numbers = #tpu.dot_dimension_numbers<[1], [0], [0], [1], [0, 0, 1, 1], [], []>} : vector<8x128xbf16>, vector<128x512xbf16>, vector<8x512xf32> -> vector<8x512xf32>
    %c0_13 = arith.constant 0 : index
    %c0_14 = arith.constant 0 : index
    %13 = vector.load %arg8[%c0_13, %c0_14] : memref<1x512xf32, #tpu.memory_space<vmem>>, vector<1x512xf32>
    %14 = vector.broadcast %13 : vector<1x512xf32> to vector<8x512xf32>
    %15 = arith.addf %12, %14 : vector<8x512xf32>
    %16 = vector.extract_strided_slice %15 {offsets = [0, 0], sizes = [8, 128], strides = [1, 1]} : vector<8x512xf32> to vector<8x128xf32>
    %17 = arith.negf %16 : vector<8x128xf32>
    %18 = math.exp %17 : vector<8x128xf32>
    %cst_15 = arith.constant 1.000000e+00 : f32
    %19 = vector.broadcast %cst_15 : f32 to vector<8x128xf32>
    %20 = arith.addf %19, %18 : vector<8x128xf32>
    %21 = arith.divf %19, %20 : vector<8x128xf32>
    %22 = vector.extract_strided_slice %15 {offsets = [0, 256], sizes = [8, 128], strides = [1, 1]} : vector<8x512xf32> to vector<8x128xf32>
    %23 = math.tanh %22 : vector<8x128xf32>
    %24 = vector.extract_strided_slice %15 {offsets = [0, 384], sizes = [8, 128], strides = [1, 1]} : vector<8x512xf32> to vector<8x128xf32>
    %25 = arith.negf %24 : vector<8x128xf32>
    %26 = math.exp %25 : vector<8x128xf32>
    %cst_16 = arith.constant 1.000000e+00 : f32
    %27 = vector.broadcast %cst_16 : f32 to vector<8x128xf32>
    %28 = arith.addf %27, %26 : vector<8x128xf32>
    %29 = arith.divf %27, %28 : vector<8x128xf32>
    %30 = arith.mulf %21, %23 : vector<8x128xf32>
    %31 = math.tanh %30 : vector<8x128xf32>
    %32 = arith.mulf %29, %31 : vector<8x128xf32>
    %c0_17 = arith.constant 0 : index
    %c0_18 = arith.constant 0 : index
    %33 = vector.load %arg9[%c0_17, %c0_18] : memref<8x256xf32, #tpu.memory_space<vmem>>, vector<8x128xf32>
    tpu.vector_store %arg9[%c0_17, %c0_18], %32 {strides = array<i32>} : memref<8x256xf32, #tpu.memory_space<vmem>>, vector<8x128xf32>,
    %c0_19 = arith.constant 0 : index
    %c0_20 = arith.constant 0 : index
    %34 = vector.load %arg10[%c0_19, %c0_20] : memref<8x128xf32, #tpu.memory_space<vmem>>, vector<8x128xf32>
    %c0_21 = arith.constant 0 : index
    %c128 = arith.constant 128 : index
    %35 = vector.load %arg9[%c0_21, %c128] : memref<8x256xf32, #tpu.memory_space<vmem>>, vector<8x128xf32>
    tpu.vector_store %arg9[%c0_21, %c128], %34 {strides = array<i32>} : memref<8x256xf32, #tpu.memory_space<vmem>>, vector<8x128xf32>,
    return
  }
  func.func @transform_0(%arg0: i32, %arg1: memref<1xi32, #tpu.memory_space<smem>>) -> (i32, i32, i32) {
    %c0_i32 = arith.constant 0 : i32
    %c0_i32_0 = arith.constant 0 : i32
    %c0_i32_1 = arith.constant 0 : i32
    return %c0_i32, %arg0, %c0_i32_0 : i32, i32, i32
  }
  func.func @transform_1(%arg0: i32, %arg1: memref<1xi32, #tpu.memory_space<smem>>) -> (i32, i32) {
    %c0_i32 = arith.constant 0 : i32
    %c0_i32_0 = arith.constant 0 : i32
    return %arg0, %c0_i32 : i32, i32
  }
  func.func @transform_2(%arg0: i32, %arg1: memref<1xi32, #tpu.memory_space<smem>>) -> (i32, i32) {
    %c0_i32 = arith.constant 0 : i32
    %c0_i32_0 = arith.constant 0 : i32
    %c0_i32_1 = arith.constant 0 : i32
    return %c0_i32, %c0_i32_0 : i32, i32
  }
  func.func @transform_3(%arg0: i32, %arg1: memref<1xi32, #tpu.memory_space<smem>>) -> (i32, i32) {
    %c0_i32 = arith.constant 0 : i32
    %c0_i32_0 = arith.constant 0 : i32
    %c0_i32_1 = arith.constant 0 : i32
    return %c0_i32, %c0_i32_0 : i32, i32
  }
  func.func @transform_4(%arg0: i32, %arg1: memref<1xi32, #tpu.memory_space<smem>>) -> (i32, i32) {
    %c0_i32 = arith.constant 0 : i32
    %c0_i32_0 = arith.constant 0 : i32
    %c0_i32_1 = arith.constant 0 : i32
    return %c0_i32, %c0_i32_0 : i32, i32
  }
  func.func @transform_5(%arg0: i32, %arg1: memref<1xi32, #tpu.memory_space<smem>>) -> (i32, i32) {
    %c0_i32 = arith.constant 0 : i32
    %c0_i32_0 = arith.constant 0 : i32
    %c0_i32_1 = arith.constant 0 : i32
    return %c0_i32, %c0_i32_0 : i32, i32
  }
  func.func @transform_6(%arg0: i32, %arg1: memref<1xi32, #tpu.memory_space<smem>>) -> (i32, i32) {
    %c0_i32 = arith.constant 0 : i32
    %c0_i32_0 = arith.constant 0 : i32
    %c0_i32_1 = arith.constant 0 : i32
    return %c0_i32, %c0_i32_0 : i32, i32
  }
  func.func @transform_7(%arg0: i32, %arg1: memref<1xi32, #tpu.memory_space<smem>>) -> (i32, i32) {
    %c0_i32 = arith.constant 0 : i32
    %c0_i32_0 = arith.constant 0 : i32
    return %arg0, %c0_i32 : i32, i32
  }
}

</mosaic_0001>

<bundles_post_ra>
// kernel: tpu_custom_call.1
= control target key start
LH: loop header
LB: loop body
LE: loop exit
PB: predicated region body
PF: predicated region fallthrough
CT: control target
= control target key end

     0   :  { %14 = vsyncpa [#allocation7], 0  ;;  %s1648_s0 = inlined_call_operand.<no memory space> [shape: s32[1], index: 0, kind: input, shape index: {}]   ;;  %s1649_s1 = inlined_call_operand.hbm [shape: bf16[8,8,128], index: 1, kind: input, shape index: {}]   ;;  %s1650_s2 = inlined_call_operand.vmem [shape: s32[8,1], index: 2, kind: input, shape index: {}]   ;;  %s1651_s3 = inlined_call_operand.hbm [shape: bf16[128,512], index: 3, kind: input, shape index: {}]   ;;  %s1652_s4 = inlined_call_operand.hbm [shape: bf16[128,512], index: 4, kind: input, shape index: {}]   ;;  %s1653_s5 = inlined_call_operand.vmem [shape: f32[1,512], index: 5, kind: input, shape index: {}]   ;;  %s1654_s6 = inlined_call_operand.hbm [shape: bf16[128,512], index: 6, kind: input, shape index: {}]   ;;  %s1655_s7 = inlined_call_operand.vmem [shape: f32[1,512], index: 7, kind: input, shape index: {}]   ;;  %s1656_s8 = inlined_call_operand.hbm [shape: f32[8,256], index: 8, kind: output, shape index: {}]  }
   0x1   :  { %15 = vsyncpa [#allocation10], 0 }
   0x2   :  { %16 = vsyncpa [#allocation13], 0 }
   0x3   :  { %17 = vsyncpa [#allocation8], 0  ;;  %s1470_s27 = smov [#allocation9]   ;;  %s1344_s9 = scalar_lea.hbm %s1651_s3, 4096 }
   0x4   :  { %s37_s28 = sshll.u32 %s1470_s27, 4  ;;  %p1345_p0 = scmp.ne.s32.totalorder %s1651_s3, %s1344_s9  ;;  %s38_s28 = int_to_ptr.vmem [resolvable:$true] %s37_s28 }
   0x5   :  { %p1348_p1 = scmp.lt.u32.totalorder %s1344_s9, %s1651_s3 }
   0x7   :  { %p1350_p2 = pnand %p1348_p1, %p1345_p0 }
   0x9   :  { %1353 = shalt.err (!%p1350_p2)
}
   0xa   :  { %s1354_s14 = scalar_lea.vmem %s38_s28, 4096  ;;  %p1359_p4 = scmp.lt.s32.totalorder %s38_s28, %s38_s28 }
   0xb   :  { %p1355_p3 = scmp.ne.s32.totalorder %s38_s28, %s1354_s14  ;;  %p1360_p5 = scmp.lt.s32.totalorder %s1354_s14, %s1354_s14 }
   0xd   :  { %p1361_p6 = por %p1360_p5, %p1359_p4 }
   0xf   :  { %p1362_p7 = pnand %p1361_p6, %p1355_p3 }
  0x11   :  { %1365 = shalt.err (!%p1362_p7)
}
  0x12   :  { %s1471_s15 = smov 256   ;;  %s1472_s16 = smov 16  }
  0x13   :  { %43 = dma.hbm_to_vmem [thread:$0]  %s1651_s3, 4096, %s38_s28, [#allocation10], %s1471_s15, %s1471_s15, %s1472_s16  }
  0x14   :  { %s1473_s19 = smov [#allocation6]   ;;  %s1366_s23 = scalar_lea.hbm %s1649_s1, 512 }
  0x15   :  { %s23_s20 = sshll.u32 %s1473_s19, 4  ;;  %p1367_p8 = scmp.ne.s32.totalorder %s1649_s1, %s1366_s23  ;;  %s24_s20 = int_to_ptr.vmem [resolvable:$true] %s23_s20 }
  0x16   :  { %p1370_p9 = scmp.lt.u32.totalorder %s1366_s23, %s1649_s1 }
  0x18   :  { %p1372_p10 = pnand %p1370_p9, %p1367_p8 }
  0x1a   :  { %1375 = shalt.err (!%p1372_p10)
}
  0x1b   :  { %s1376_s29 = scalar_lea.vmem %s24_s20, 512  ;;  %p1381_p12 = scmp.lt.s32.totalorder %s24_s20, %s24_s20 }
  0x1c   :  { %p1377_p11 = scmp.ne.s32.totalorder %s24_s20, %s1376_s29  ;;  %p1382_p13 = scmp.lt.s32.totalorder %s1376_s29, %s1376_s29 }
  0x1e   :  { %p1383_p0 = por %p1382_p13, %p1381_p12 }
  0x20   :  { %p1384_p1 = pnand %p1383_p0, %p1377_p11 }
  0x22   :  { %1387 = shalt.err (!%p1384_p1)
}
  0x23   :  { %s1474_s3 = smov 64   ;;  %s1475_s28 = smov 4  }
  0x24   :  { %29 = dma.hbm_to_vmem [thread:$0]  %s1649_s1, 512, %s24_s20, [#allocation7], %s1474_s3, %s1474_s3, %s1475_s28  }
  0x25   :  { %s1476_s10 = smov [#allocation11]   ;;  %s1477_s12 = smov [#allocation12]  }
  0x26   :  { %s49_s11 = sshll.u32 %s1476_s10, 4  ;;  %s63_s13 = sshll.u32 %s1477_s12, 4  ;;  %s50_s11 = int_to_ptr.vmem [resolvable:$true] %s49_s11  ;;  %s1554_s13 = int_to_ptr.vmem [resolvable:$true] %s63_s13 }
  0x27   :  { %s1388_s18 = scalar_lea.hbm %s1652_s4, 4096 }
  0x28   :  { %p1389_p2 = scmp.ne.s32.totalorder %s1652_s4, %s1388_s18  ;;  %p1392_p3 = scmp.lt.u32.totalorder %s1388_s18, %s1652_s4 }
  0x2a   :  { %p1394_p4 = pnand %p1392_p3, %p1389_p2 }
  0x2c   :  { %1397 = shalt.err (!%p1394_p4)
}
  0x2d   :  { %s1398_s1 = scalar_lea.vmem %s50_s11, 4096  ;;  %p1403_p6 = scmp.lt.s32.totalorder %s50_s11, %s50_s11 }
  0x2e   :  { %p1399_p5 = scmp.ne.s32.totalorder %s50_s11, %s1398_s1  ;;  %p1404_p7 = scmp.lt.s32.totalorder %s1398_s1, %s1398_s1 }
  0x30   :  { %p1405_p8 = por %p1404_p7, %p1403_p6 }
  0x32   :  { %p1406_p9 = pnand %p1405_p8, %p1399_p5 }
  0x34   :  { %1409 = shalt.err (!%p1406_p9)
}
  0x35   :  { %55 = dma.hbm_to_vmem [thread:$0]  %s1652_s4, 4096, %s50_s11, [#allocation10], %s1471_s15, %s1471_s15, %s1472_s16  }
  0x36   :  { %s1410_s27 = scalar_lea.hbm %s1654_s6, 4096 }
  0x37   :  { %p1411_p10 = scmp.ne.s32.totalorder %s1654_s6, %s1410_s27  ;;  %p1414_p11 = scmp.lt.u32.totalorder %s1410_s27, %s1654_s6 }
  0x39   :  { %p1416_p12 = pnand %p1414_p11, %p1411_p10 }
  0x3b   :  { %1419 = shalt.err (!%p1416_p12)
}
  0x3c   :  { %s1420_s9 = scalar_lea.vmem %s1554_s13, 4096  ;;  %p1425_p0 = scmp.lt.s32.totalorder %s1554_s13, %s1554_s13 }
  0x3d   :  { %p1421_p13 = scmp.ne.s32.totalorder %s1554_s13, %s1420_s9  ;;  %p1426_p1 = scmp.lt.s32.totalorder %s1420_s9, %s1420_s9 }
  0x3f   :  { %p1427_p2 = por %p1426_p1, %p1425_p0 }
  0x41   :  { %p1428_p3 = pnand %p1427_p2, %p1421_p13 }
  0x43   :  { %1431 = shalt.err (!%p1428_p3)
}
  0x44   :  { %69 = dma.hbm_to_vmem [thread:$0]  %s1654_s6, 4096, %s1554_s13, [#allocation13], %s1471_s15, %s1471_s15, %s1472_s16  }
  0x45   :  { %1458 = dma.done.wait [#allocation7], 512  }
  0x46   :  { %1459 = vsyncadd [#allocation7], 4294966784 }
  0x47   :  { %1460 = dma.done.wait [#allocation10], 8192  }
  0x48   :  { %1461 = vsyncadd [#allocation10], 4294959104 }
  0x49   :  { %1462 = dma.done.wait [#allocation13], 4096  }
  0x4a   :  { %1463 = vsyncadd [#allocation13], 4294963200  ;;  %v1478_v0 = vmov 0.0   ;;  %v1594_v1 = vld [vmem:[%s1650_s2] sm:$0xff]  ;;  %p1047_p4 = scmp.le.s32.totalorder %s1648_s0, 0 }
  0x4b   :  { %85 = vst [vmem:[#allocation2] sm:$0xff] %v1478_v0  ;;  %86 = vst [vmem:[#allocation3] sm:$0xff] %v1478_v0  ;;  %s1599_s6 = smov (!%p1047_p4), 0  }
  0x4c   :  { %1044 = sbr.rel (%p1047_p4) target bundleno = 411 (0x19b), region = 66 }
  0x53 LB: > { %v1172_v2 = vld [vmem:[#allocation11 + $0x4] ss:$16 sps:$4 sm:$0xff]   ;;  %s1048_s13 = sadd.s32 4294967295, %s1648_s0  ;;  %v1174_v3 = vld [vmem:[#allocation11 + $0xc] ss:$16 sps:$4 sm:$0xff]   ;;  %v1479_v4 = vmov 0   ;;  %s1468_s6 = sphi %s1599_s6, %s92_s6  }
  0x54   : > { %358 = vmatprep.mubr.bf16.mxu0 %v1479_v4  ;;  %399 = vmatprep.mubr.bf16.mxu1 %v1479_v4  ;;  %v1176_v5 = vld [vmem:[#allocation11] ss:$16 sps:$4 sm:$0xff]   ;;  %v1177_v6 = vld [vmem:[#allocation11 + $0x8] ss:$16 sps:$4 sm:$0xff]   ;;  %s1610_s2 = ssub.s32 %s1048_s13, %s1468_s6  ;;  %v1178_v7 = vld [vmem:[#allocation11 + $0x24] ss:$16 sps:$4 sm:$0xff]  }
  0x55   : > { %326 = vmatprep.subr.bf16.mxu0 %v1172_v2  ;;  %1171 = vset.pattern.permute.xlu0 %v1479_v4  ;;  %v701_v8 = vstv %s1610_s2  ;;  %v1180_v9 = vld [vmem:[#allocation11 + $0x2c] ss:$16 sps:$4 sm:$0xff]   ;;  %v1182_v10 = vld [vmem:[#allocation11 + $0x20] ss:$16 sps:$4 sm:$0xff]   ;;  %v1183_v11 = vld [vmem:[#allocation11 + $0x28] ss:$16 sps:$4 sm:$0xff]  }
  0x56   : > { %367 = vmatprep.subr.bf16.mxu1 %v1174_v3  ;;  %327 = vmatpush1.bf16.msra.mxu0 %v1176_v5  ;;  %vm702_vm0 = vcmp.lt.s32.totalorder %v701_v8, %v1594_v1  ;;  %v1184_v13 = vld [vmem:[#allocation11 + $0x44] ss:$16 sps:$4 sm:$0xff]   ;;  %v1186_v14 = vld [vmem:[#allocation11 + $0x4c] ss:$16 sps:$4 sm:$0xff]   ;;  %v1188_v15 = vld [vmem:[#allocation11 + $0x40] ss:$16 sps:$4 sm:$0xff]  }
  0x57   : > { %368 = vmatpush1.bf16.msra.mxu1 %v1177_v6  ;;  %328 = vmatprep.subr.bf16.mxu0 %v1178_v7  ;;  %v703_v12 = vsel %vm702_vm0, 1, %v1479_v4  ;;  %v1189_v16 = vld [vmem:[#allocation11 + $0x48] ss:$16 sps:$4 sm:$0xff]   ;;  %v1190_v17 = vld [vmem:[#allocation11 + $0x64] ss:$16 sps:$4 sm:$0xff]   ;;  %s1049_s18 = sshll.u32 %s1610_s2, 2 }
  0x58   : > { %369 = vmatprep.subr.bf16.mxu1 %v1180_v9  ;;  %705 = vperm.xlu0 %1171, %v703_v12   ;;  %v1192_v18 = vld [vmem:[#allocation11 + $0x6c] ss:$16 sps:$4 sm:$0xff]   ;;  %v1194_v19 = vld [vmem:[#allocation11 + $0x60] ss:$16 sps:$4 sm:$0xff]   ;;  %v1195_v20 = vld [vmem:[#allocation11 + $0x68] ss:$16 sps:$4 sm:$0xff]  }
  0x59   : > { %v1196_v21 = vld [vmem:[#allocation11 + $0x84] ss:$16 sps:$4 sm:$0xff]   ;;  %v1198_v22 = vld [vmem:[#allocation11 + $0x8c] ss:$16 sps:$4 sm:$0xff]   ;;  %v1200_v23 = vld [vmem:[#allocation11 + $0x80] ss:$16 sps:$4 sm:$0xff]  }
  0x5a   : > { %329 = vmatpush1.bf16.msra.mxu0 %v1182_v10  ;;  %v1201_v24 = vld [vmem:[#allocation11 + $0x88] ss:$16 sps:$4 sm:$0xff]   ;;  %v1202_v25 = vld [vmem:[#allocation11 + $0xa4] ss:$16 sps:$4 sm:$0xff]   ;;  %v1204_v26 = vld [vmem:[#allocation11 + $0xac] ss:$16 sps:$4 sm:$0xff]  }
  0x5b   : > { %370 = vmatpush1.bf16.msra.mxu1 %v1183_v11  ;;  %330 = vmatprep.subr.bf16.mxu0 %v1184_v13  ;;  %v1206_v27 = vld [vmem:[#allocation11 + $0xa0] ss:$16 sps:$4 sm:$0xff]   ;;  %v1207_v28 = vld [vmem:[#allocation11 + $0xa8] ss:$16 sps:$4 sm:$0xff]   ;;  %v1208_v29 = vld [vmem:[#allocation11 + $0xc4] ss:$16 sps:$4 sm:$0xff]  }
  0x5c   : > { %371 = vmatprep.subr.bf16.mxu1 %v1186_v14  ;;  %v1210_v30 = vld [vmem:[#allocation11 + $0xcc] ss:$16 sps:$4 sm:$0xff]   ;;  %v1212_v31 = vld [vmem:[#allocation11 + $0xc0] ss:$16 sps:$4 sm:$0xff]   ;;  %v1213_v32 = vld [vmem:[#allocation11 + $0xc8] ss:$16 sps:$4 sm:$0xff]  }
  0x5d   : > { %v1214_v33 = vld [vmem:[#allocation11 + $0xe4] ss:$16 sps:$4 sm:$0xff]   ;;  %v1216_v34 = vld [vmem:[#allocation11 + $0xec] ss:$16 sps:$4 sm:$0xff]   ;;  %v1218_v35 = vld [vmem:[#allocation11 + $0xe0] ss:$16 sps:$4 sm:$0xff]  }
  0x5e   : > { %331 = vmatpush1.bf16.msra.mxu0 %v1188_v15  ;;  %v1219_v36 = vld [vmem:[#allocation11 + $0xe8] ss:$16 sps:$4 sm:$0xff]   ;;  %v1616_v37 = vld [vmem:[#allocation2] sm:$0xff]  ;;  %v1225_v39 = vld [vmem:[#allocation9 + $0xc] ss:$16 sps:$4 sm:$0xff]   ;;  %s98_s19 = scalar_lea.vmem [#allocation6], %s1049_s18 }
  0x5f   : > { %372 = vmatpush1.bf16.msra.mxu1 %v1189_v16  ;;  %332 = vmatprep.subr.bf16.mxu0 %v1190_v17  ;;  %v1222_v38 = vld [vmem:[#allocation9 + $0x4] ss:$16 sps:$4 sm:$0xff]   ;;  %v133_v40 = vpack.c.bf16 %v1616_v37, %v1616_v37  ;;  %v1220_v41 = vld [vmem:[#allocation9] ss:$16 sps:$4 sm:$0xff]   ;;  %v1223_v42 = vld [vmem:[#allocation9 + $0x8] ss:$16 sps:$4 sm:$0xff]   ;;  %v652_v17 = vlaneseq }
  0x60   : > { %373 = vmatprep.subr.bf16.mxu1 %v1192_v18  ;;  %v1228_v43 = vld [vmem:[#allocation9 + $0x24] ss:$16 sps:$4 sm:$0xff]   ;;  %v1231_v44 = vld [vmem:[#allocation9 + $0x2c] ss:$16 sps:$4 sm:$0xff]   ;;  %v1226_v45 = vld [vmem:[#allocation9 + $0x20] ss:$16 sps:$4 sm:$0xff]  }
  0x61   : > { %v1229_v46 = vld [vmem:[#allocation9 + $0x28] ss:$16 sps:$4 sm:$0xff]   ;;  %v1234_v47 = vld [vmem:[#allocation9 + $0x44] ss:$16 sps:$4 sm:$0xff]   ;;  %v1237_v48 = vld [vmem:[#allocation9 + $0x4c] ss:$16 sps:$4 sm:$0xff]  }
  0x62   : > { %333 = vmatpush1.bf16.msra.mxu0 %v1194_v19  ;;  %v1232_v49 = vld [vmem:[#allocation9 + $0x40] ss:$16 sps:$4 sm:$0xff]   ;;  %v1235_v50 = vld [vmem:[#allocation9 + $0x48] ss:$16 sps:$4 sm:$0xff]   ;;  %v1240_v51 = vld [vmem:[#allocation9 + $0x64] ss:$16 sps:$4 sm:$0xff]  }
  0x63   : > { %374 = vmatpush1.bf16.msra.mxu1 %v1195_v20  ;;  %334 = vmatprep.subr.bf16.mxu0 %v1196_v21  ;;  %v1243_v52 = vld [vmem:[#allocation9 + $0x6c] ss:$16 sps:$4 sm:$0xff]   ;;  %v1238_v53 = vld [vmem:[#allocation9 + $0x60] ss:$16 sps:$4 sm:$0xff]   ;;  %v1241_v54 = vld [vmem:[#allocation9 + $0x68] ss:$16 sps:$4 sm:$0xff]  }
  0x64   : > { %375 = vmatprep.subr.bf16.mxu1 %v1198_v22  ;;  %v1246_v55 = vld [vmem:[#allocation9 + $0x84] ss:$16 sps:$4 sm:$0xff]   ;;  %v1249_v56 = vld [vmem:[#allocation9 + $0x8c] ss:$16 sps:$4 sm:$0xff]   ;;  %v1244_v57 = vld [vmem:[#allocation9 + $0x80] ss:$16 sps:$4 sm:$0xff]  }
  0x65   : > { %v1247_v58 = vld [vmem:[#allocation9 + $0x88] ss:$16 sps:$4 sm:$0xff]   ;;  %v1252_v59 = vld [vmem:[#allocation9 + $0xa4] ss:$16 sps:$4 sm:$0xff]   ;;  %v1255_v60 = vld [vmem:[#allocation9 + $0xac] ss:$16 sps:$4 sm:$0xff]  }
  0x66   : > { %335 = vmatpush1.bf16.msra.mxu0 %v1200_v23  ;;  %v1250_v61 = vld [vmem:[#allocation9 + $0xa0] ss:$16 sps:$4 sm:$0xff]   ;;  %v1253_v62 = vld [vmem:[#allocation9 + $0xa8] ss:$16 sps:$4 sm:$0xff]   ;;  %v1258_v63 = vld [vmem:[#allocation9 + $0xc4] ss:$16 sps:$4 sm:$0xff]  }
  0x67   : > { %376 = vmatpush1.bf16.msra.mxu1 %v1201_v24  ;;  %336 = vmatprep.subr.bf16.mxu0 %v1202_v25  ;;  %v1261_v0 = vld [vmem:[#allocation9 + $0xcc] ss:$16 sps:$4 sm:$0xff]   ;;  %v1256_v2 = vld [vmem:[#allocation9 + $0xc0] ss:$16 sps:$4 sm:$0xff]   ;;  %v1259_v3 = vld [vmem:[#allocation9 + $0xc8] ss:$16 sps:$4 sm:$0xff]  }
  0x68   : > { %377 = vmatprep.subr.bf16.mxu1 %v1204_v26  ;;  %v1267_v5 = vld [vmem:[#allocation9 + $0xec] ss:$16 sps:$4 sm:$0xff]   ;;  %v1262_v6 = vld [vmem:[#allocation9 + $0xe0] ss:$16 sps:$4 sm:$0xff]   ;;  %v1265_v7 = vld [vmem:[#allocation9 + $0xe8] ss:$16 sps:$4 sm:$0xff]  }
  0x69   : > { %v99_v8 = vld [vmem:[%s98_s19] sm:$0xf]  ;;  %v653_v18 = vshrl.u32 %v652_v17, 7  ;;  %s92_s6 = sadd.s32 1, %s1468_s6  }
  0x6a   : > { %337 = vmatpush1.bf16.msra.mxu0 %v1206_v27  ;;  %v650_v20 = vld [vmem:[%s1653_s5] sm:$0xf]  ;;  %p91_p5 = scmp.ge.s32.totalorder %s92_s6, %s1648_s0 }
  0x6b   : > { %378 = vmatpush1.bf16.msra.mxu1 %v1207_v28  ;;  %338 = vmatprep.subr.bf16.mxu0 %v1208_v29  ;;  %v654_v19 = vsub.s32 0, %v653_v18  ;;  %v658_v21 = vsub.s32 1, %v653_v18 }
  0x6c   : > { %379 = vmatprep.subr.bf16.mxu1 %v1210_v30 }
  0x6d   : > { %v655_v22 = vrot.slane %v650_v20, %v654_v19  ;;  %v659_v25 = vrot.slane %v650_v20, %v658_v21 }
  0x6e   : > { %339 = vmatpush1.bf16.msra.mxu0 %v1212_v31 }
  0x6f   : > { %380 = vmatpush1.bf16.msra.mxu1 %v1213_v32  ;;  %340 = vmatprep.subr.bf16.mxu0 %v1214_v33  ;;  %v666_v32 = vsub.s32 3, %v653_v18 }
  0x70   : > { %381 = vmatprep.subr.bf16.mxu1 %v1216_v34 }
  0x72   : > { %341 = vmatpush1.bf16.msra.mxu0 %v1218_v35 }
  0x73   : > { %382 = vmatpush1.bf16.msra.mxu1 %v1219_v36  ;;  %568 = vmatprep.subr.bf16.mxu0 %v1222_v38 }
  0x74   : > { %609 = vmatprep.subr.bf16.mxu1 %v1225_v39 }
  0x75   : > { %359 = vmatmul.mubr.bf16.vlgmr.msra.gmra.mrb[0].mxu0 %v133_v40 }
  0x76   : > { %400 = vmatmul.mubr.bf16.vlgmr.msra.gmra.mrb[0].mxu1 %v133_v40  ;;  %569 = vmatpush1.bf16.msra.mxu0 %v1220_v41 }
  0x77   : > { %610 = vmatpush1.bf16.msra.mxu1 %v1223_v42  ;;  %570 = vmatprep.subr.bf16.mxu0 %v1228_v43  ;;  %v667_v42 = vrot.slane %v650_v20, %v666_v32  ;;  %v662_v43 = vsub.s32 2, %v653_v18 }
  0x78   : > { %611 = vmatprep.subr.bf16.mxu1 %v1231_v44  ;;  %600 = vmatprep.mubr.bf16.mxu0 %v1479_v4 }
  0x79   : > { %641 = vmatprep.mubr.bf16.mxu1 %v1479_v4  ;;  %v1264_v4 = vld [vmem:[#allocation9 + $0xe4] ss:$16 sps:$4 sm:$0xff]  }
  0x7a   : > { %571 = vmatpush1.bf16.msra.mxu0 %v1226_v45  ;;  %v663_v45 = vrot.slane %v650_v20, %v662_v43 }
  0x7b   : > { %612 = vmatpush1.bf16.msra.mxu1 %v1229_v46  ;;  %572 = vmatprep.subr.bf16.mxu0 %v1234_v47 }
  0x7c   : > { %613 = vmatprep.subr.bf16.mxu1 %v1237_v48 }
  0x7e   : > { %573 = vmatpush1.bf16.msra.mxu0 %v1232_v49 }
  0x7f   : > { %614 = vmatpush1.bf16.msra.mxu1 %v1235_v50  ;;  %574 = vmatprep.subr.bf16.mxu0 %v1240_v51 }
  0x80   : > { %615 = vmatprep.subr.bf16.mxu1 %v1243_v52 }
  0x82   : > { %575 = vmatpush1.bf16.msra.mxu0 %v1238_v53 }
  0x83   : > { %616 = vmatpush1.bf16.msra.mxu1 %v1241_v54  ;;  %576 = vmatprep.subr.bf16.mxu0 %v1246_v55  ;;  %v695_v54 = vld [vmem:[#allocation3] sm:$0xff] }
  0x84   : > { %617 = vmatprep.subr.bf16.mxu1 %v1249_v56 }
  0x86   : > { %577 = vmatpush1.bf16.msra.mxu0 %v1244_v57 }
  0x87   : > { %618 = vmatpush1.bf16.msra.mxu1 %v1247_v58  ;;  %578 = vmatprep.subr.bf16.mxu0 %v1252_v59 }
  0x88   : > { %619 = vmatprep.subr.bf16.mxu1 %v1255_v60 }
  0x8a   : > { %579 = vmatpush1.bf16.msra.mxu0 %v1250_v61 }
  0x8b   : > { %620 = vmatpush1.bf16.msra.mxu1 %v1253_v62  ;;  %580 = vmatprep.subr.bf16.mxu0 %v1258_v63 }
  0x8c   : > { %621 = vmatprep.subr.bf16.mxu1 %v1261_v0 }
  0x8e   : > { %581 = vmatpush1.bf16.msra.mxu0 %v1256_v2 }
  0x8f   : > { %622 = vmatpush1.bf16.msra.mxu1 %v1259_v3  ;;  %582 = vmatprep.subr.bf16.mxu0 %v1264_v4 }
  0x90   : > { %623 = vmatprep.subr.bf16.mxu1 %v1267_v5 }
  0x92   : > { %583 = vmatpush1.bf16.msra.mxu0 %v1262_v6 }
  0x93   : > { %624 = vmatpush1.bf16.msra.mxu1 %v1265_v7 }
  0x95   : > { %601 = vmatmul.mubr.bf16.vlgmr.msra.gmra.mrb[4].mxu0 %v99_v8 }
  0x96   : > { %642 = vmatmul.mubr.bf16.vlgmr.msra.gmra.mrb[4].mxu1 %v99_v8 }
  0xd7   : > { %v706_v56 = vpop.permute.xlu0 %705 }
  0xd8   : > { %vm707_vm1 = vcmp.eq.s32.totalorder %v706_v56, 1 }
 0x148   : > { %v360_v9 = vpop.f32.mrb[0].mxu0 }
 0x149   : > { %v401_v10 = vpop.f32.mrb[0].mxu1  ;;  %v362_v11 = vpop.f32.mrb[1].mxu0 }
 0x14a   : > { %v403_v12 = vpop.f32.mrb[1].mxu1  ;;  %v364_v13 = vpop.f32.mrb[2].mxu0 }
 0x14b   : > { %v405_v14 = vpop.f32.mrb[2].mxu1  ;;  %v365_v15 = vpop.f32.mrb[3].mxu0 }
 0x14c   : > { %v406_v16 = vpop.f32.mrb[3].mxu1 }
 0x168   : > { %v602_v23 = vpop.f32.mrb[4].mxu0 }
 0x169   : > { %v643_v24 = vpop.f32.mrb[4].mxu1  ;;  %v603_v26 = vadd.f32 %v602_v23, %v360_v9  ;;  %v604_v28 = vpop.f32.mrb[5].mxu0 }
 0x16a   : > { %v644_v27 = vadd.f32 %v643_v24, %v401_v10  ;;  %v645_v29 = vpop.f32.mrb[5].mxu1  ;;  %v605_v30 = vadd.f32 %v604_v28, %v362_v11  ;;  %v606_v33 = vpop.f32.mrb[6].mxu0 }
 0x16b   : > { %v646_v31 = vadd.f32 %v645_v29, %v403_v12  ;;  %v647_v34 = vpop.f32.mrb[6].mxu1  ;;  %v672_v35 = vadd.f32 %v655_v22, %v603_v26  ;;  %v607_v36 = vpop.f32.mrb[7].mxu0 }
 0x16c   : > { %v648_v38 = vpop.f32.mrb[7].mxu1  ;;  %v673_v39 = vadd.f32 %v659_v25, %v605_v30  ;;  %v674_v47 = vadd.f32 %v663_v45, %v644_v27 }
 0x16d   : > { %v1114_v40 = vmul.f32 -1.442695, %v672_v35  ;;  %v675_v44 = vadd.f32 %v667_v42, %v646_v31 }
 0x16e   : > { %v1115_v41 = vmul.f32 -1.442695, %v673_v39 }
 0x16f   : > { %1268 = vpow2.f32 %v1114_v40  ;;  %v1116_v46 = vmul.f32 -1.442695, %v675_v44 }
 0x170   : > { %1270 = vpow2.f32 %v1115_v41 }
 0x171   : > { %1272 = vpow2.f32 %v1116_v46 }
 0x172   : > { %1274 = vtanh.f32 %v674_v47 }
 0x179   : > { %v1269_v48 = vpop.eup %1268 }
 0x17a   : > { %v1271_v49 = vpop.eup %1270  ;;  %v679_v50 = vadd.f32 1.0, %v1269_v48 }
 0x17b   : > { %v685_v51 = vadd.f32 1.0, %v1271_v49  ;;  %v1273_v52 = vpop.eup %1272 }
 0x17c   : > { %1276 = vrcp.f32 %v679_v50  ;;  %v1275_v53 = vpop.eup %1274  ;;  %v692_v58 = vadd.f32 1.0, %v1273_v52 }
 0x17d   : > { %1278 = vrcp.f32 %v685_v51 }
 0x17e   : > { %1280 = vrcp.f32 %v692_v58 }
 0x186   : > { %v1277_v55 = vpop.eup %1276 }
 0x187   : > { %v1279_v57 = vpop.eup %1278  ;;  %v697_v59 = vmul.f32 %v1277_v55, %v1275_v53 }
 0x188   : > { %v696_v60 = vmul.f32 %v1279_v57, %v695_v54  ;;  %v1281_v63 = vpop.eup %1280 }
 0x18a   : > { %v698_v61 = vadd.f32 %v697_v59, %v696_v60 }
 0x18c   : > { %1282 = vtanh.f32 %v698_v61  ;;  %v708_v62 = vsel %vm707_vm1, %v698_v61, %v695_v54 }
 0x18d   : > { %709 = vst [vmem:[#allocation3] sm:$0xff] %v708_v62 }
 0x194   :  { %94 = sbr.rel (!%p91_p5) target bundleno = 83 (0x53), region = 72 }
 0x196   : > { %v1283_v0 = vpop.eup %1282 }
 0x197   : > { %v700_v2 = vmul.f32 %v1283_v0, %v1281_v63 }
 0x199   : > { %v711_v3 = vsel %vm707_vm1, %v700_v2, %v1616_v37 }
 0x19a   : > { %712 = vst [vmem:[#allocation2] sm:$0xff] %v711_v3 }
 0x19b PF:  { %v1284_v4 = vld [vmem:[#allocation12 + $0x4] ss:$16 sps:$4 sm:$0xff]   ;;  %v1286_v5 = vld [vmem:[#allocation12] ss:$16 sps:$4 sm:$0xff]   ;;  %v1480_v6 = vmov 0   ;;  %v748_v38 = vlaneseq }
 0x19c   :  { %955 = vmatprep.mubr.bf16.mxu0 %v1480_v6  ;;  %995 = vmatprep.mubr.bf16.mxu1 %v1480_v6  ;;  %v1287_v7 = vld [vmem:[#allocation12 + $0x24] ss:$16 sps:$4 sm:$0xff]   ;;  %v1289_v37 = vld [vmem:[#allocation12 + $0x20] ss:$16 sps:$4 sm:$0xff]   ;;  %v1293_v9 = vld [vmem:[#allocation12 + $0xc] ss:$16 sps:$4 sm:$0xff]  }
 0x19d   :  { %923 = vmatprep.subr.bf16.mxu0 %v1284_v4  ;;  %v1290_v8 = vld [vmem:[#allocation12 + $0x44] ss:$16 sps:$4 sm:$0xff]   ;;  %v1295_v10 = vld [vmem:[#allocation12 + $0x8] ss:$16 sps:$4 sm:$0xff]   ;;  %v1292_v11 = vld [vmem:[#allocation12 + $0x40] ss:$16 sps:$4 sm:$0xff]   ;;  %963 = vmatprep.subr.bf16.mxu1 %v1293_v9 }
 0x19e   :  { %924 = vmatpush1.bf16.msra.mxu0 %v1286_v5  ;;  %964 = vmatpush1.bf16.msra.mxu1 %v1295_v10  ;;  %v1299_v12 = vld [vmem:[#allocation12 + $0x2c] ss:$16 sps:$4 sm:$0xff]   ;;  %v1301_v13 = vld [vmem:[#allocation12 + $0x28] ss:$16 sps:$4 sm:$0xff]   ;;  %v1296_v1 = vld [vmem:[#allocation12 + $0x64] ss:$16 sps:$4 sm:$0xff]  }
 0x19f   :  { %925 = vmatprep.subr.bf16.mxu0 %v1287_v7  ;;  %965 = vmatprep.subr.bf16.mxu1 %v1299_v12  ;;  %v1298_v14 = vld [vmem:[#allocation12 + $0x60] ss:$16 sps:$4 sm:$0xff]   ;;  %v1305_v15 = vld [vmem:[#allocation12 + $0x4c] ss:$16 sps:$4 sm:$0xff]   ;;  %v1302_v16 = vld [vmem:[#allocation12 + $0x84] ss:$16 sps:$4 sm:$0xff]  }
 0x1a0   :  { %v1307_v17 = vld [vmem:[#allocation12 + $0x48] ss:$16 sps:$4 sm:$0xff]   ;;  %v1311_v18 = vld [vmem:[#allocation12 + $0x6c] ss:$16 sps:$4 sm:$0xff]   ;;  %v1304_v19 = vld [vmem:[#allocation12 + $0x80] ss:$16 sps:$4 sm:$0xff]  }
 0x1a1   :  { %v1308_v20 = vld [vmem:[#allocation12 + $0xa4] ss:$16 sps:$4 sm:$0xff]   ;;  %v1313_v21 = vld [vmem:[#allocation12 + $0x68] ss:$16 sps:$4 sm:$0xff]   ;;  %v1317_v22 = vld [vmem:[#allocation12 + $0x8c] ss:$16 sps:$4 sm:$0xff]  }
 0x1a2   :  { %926 = vmatpush1.bf16.msra.mxu0 %v1289_v37  ;;  %966 = vmatpush1.bf16.msra.mxu1 %v1301_v13  ;;  %v1310_v23 = vld [vmem:[#allocation12 + $0xa0] ss:$16 sps:$4 sm:$0xff]   ;;  %v1314_v24 = vld [vmem:[#allocation12 + $0xc4] ss:$16 sps:$4 sm:$0xff]   ;;  %v1319_v25 = vld [vmem:[#allocation12 + $0x88] ss:$16 sps:$4 sm:$0xff]  }
 0x1a3   :  { %927 = vmatprep.subr.bf16.mxu0 %v1290_v8  ;;  %967 = vmatprep.subr.bf16.mxu1 %v1305_v15  ;;  %v1323_v26 = vld [vmem:[#allocation12 + $0xac] ss:$16 sps:$4 sm:$0xff]   ;;  %v1316_v27 = vld [vmem:[#allocation12 + $0xc0] ss:$16 sps:$4 sm:$0xff]   ;;  %v1325_v28 = vld [vmem:[#allocation12 + $0xa8] ss:$16 sps:$4 sm:$0xff]  }
 0x1a4   :  { %v1320_v29 = vld [vmem:[#allocation12 + $0xe4] ss:$16 sps:$4 sm:$0xff]   ;;  %v1326_v30 = vld [vmem:[#allocation12 + $0xcc] ss:$16 sps:$4 sm:$0xff]   ;;  %v1322_v31 = vld [vmem:[#allocation12 + $0xe0] ss:$16 sps:$4 sm:$0xff]  }
 0x1a5   :  { %v1328_v32 = vld [vmem:[#allocation12 + $0xc8] ss:$16 sps:$4 sm:$0xff]   ;;  %v1329_v33 = vld [vmem:[#allocation12 + $0xec] ss:$16 sps:$4 sm:$0xff]   ;;  %v713_v34 = vld [vmem:[#allocation6] sm:$0xf] }
 0x1a6   :  { %928 = vmatpush1.bf16.msra.mxu0 %v1292_v11  ;;  %968 = vmatpush1.bf16.msra.mxu1 %v1307_v17  ;;  %v1331_v35 = vld [vmem:[#allocation12 + $0xe8] ss:$16 sps:$4 sm:$0xff]   ;;  %v1021_v36 = vld [vmem:[#allocation2] sm:$0xff]  ;;  %v749_v39 = vshrl.u32 %v748_v38, 7 }
 0x1a7   :  { %929 = vmatprep.subr.bf16.mxu0 %v1296_v1  ;;  %969 = vmatprep.subr.bf16.mxu1 %v1311_v18  ;;  %1022 = vst [vmem:[#allocation14 + $0x8] sm:$0xff] %v1021_v36  ;;  %v746_v41 = vld [vmem:[%s1655_s7] sm:$0xf]  ;;  %s1481_s7 = smov [#allocation14]  }
 0x1a8   :  { %v750_v40 = vsub.s32 0, %v749_v39  ;;  %v758_v43 = vsub.s32 3, %v749_v39  ;;  %v754_v52 = vsub.s32 2, %v749_v39  ;;  %s1029_s20 = sshll.u32 %s1481_s7, 4  ;;  %s1030_s20 = int_to_ptr.vmem [resolvable:$true] %s1029_s20 }
 0x1a9   :  { %s1432_s24 = scalar_lea.vmem %s1030_s20, 256  ;;  %p1437_p7 = scmp.lt.s32.totalorder %s1030_s20, %s1030_s20 }
 0x1aa   :  { %930 = vmatpush1.bf16.msra.mxu0 %v1298_v14  ;;  %970 = vmatpush1.bf16.msra.mxu1 %v1313_v21  ;;  %v751_v42 = vrot.slane %v746_v41, %v750_v40  ;;  %v759_v48 = vrot.slane %v746_v41, %v758_v43  ;;  %v755_v58 = vrot.slane %v746_v41, %v754_v52  ;;  %p1433_p6 = scmp.ne.s32.totalorder %s1030_s20, %s1432_s24  ;;  %p1438_p8 = scmp.lt.s32.totalorder %s1432_s24, %s1432_s24 }
 0x1ab   :  { %931 = vmatprep.subr.bf16.mxu0 %v1302_v16  ;;  %971 = vmatprep.subr.bf16.mxu1 %v1317_v22 }
 0x1ac   :  { %p1439_p9 = por %p1438_p8, %p1437_p7 }
 0x1ae   :  { %932 = vmatpush1.bf16.msra.mxu0 %v1304_v19  ;;  %972 = vmatpush1.bf16.msra.mxu1 %v1319_v25  ;;  %p1440_p10 = pnand %p1439_p9, %p1433_p6 }
 0x1af   :  { %933 = vmatprep.subr.bf16.mxu0 %v1308_v20  ;;  %973 = vmatprep.subr.bf16.mxu1 %v1323_v26 }
 0x1b2   :  { %934 = vmatpush1.bf16.msra.mxu0 %v1310_v23  ;;  %974 = vmatpush1.bf16.msra.mxu1 %v1325_v28 }
 0x1b3   :  { %935 = vmatprep.subr.bf16.mxu0 %v1314_v24  ;;  %975 = vmatprep.subr.bf16.mxu1 %v1326_v30 }
 0x1b6   :  { %936 = vmatpush1.bf16.msra.mxu0 %v1316_v27  ;;  %976 = vmatpush1.bf16.msra.mxu1 %v1328_v32 }
 0x1b7   :  { %937 = vmatprep.subr.bf16.mxu0 %v1320_v29  ;;  %977 = vmatprep.subr.bf16.mxu1 %v1329_v33 }
 0x1ba   :  { %938 = vmatpush1.bf16.msra.mxu0 %v1322_v31  ;;  %978 = vmatpush1.bf16.msra.mxu1 %v1331_v35 }
 0x1bd   :  { %956 = vmatmul.mubr.bf16.vlgmr.msra.gmra.mrb[0].mxu0 %v713_v34  ;;  %996 = vmatmul.mubr.bf16.vlgmr.msra.gmra.mrb[0].mxu1 %v713_v34 }
 0x290   :  { %v957_v44 = vpop.f32.mrb[0].mxu0  ;;  %v997_v51 = vpop.f32.mrb[0].mxu1 }
 0x291   :  { %v958_v45 = vadd.f32 %v957_v44, %v751_v42  ;;  %v959_v46 = vpop.f32.mrb[1].mxu0  ;;  %v999_v53 = vpop.f32.mrb[1].mxu1  ;;  %v998_v59 = vadd.f32 %v997_v51, %v755_v58 }
 0x292   :  { %v960_v47 = vpop.f32.mrb[2].mxu0  ;;  %v1000_v54 = vadd.f32 %v999_v53, %v759_v48  ;;  %v1001_v55 = vpop.f32.mrb[2].mxu1 }
 0x293   :  { %v1149_v49 = vmul.f32 -1.442695, %v958_v45  ;;  %v961_v50 = vpop.f32.mrb[3].mxu0  ;;  %v1002_v56 = vpop.f32.mrb[3].mxu1 }
 0x294   :  { %v1150_v57 = vmul.f32 -1.442695, %v1000_v54 }
 0x295   :  { %1332 = vpow2.f32 %v1149_v49 }
 0x296   :  { %1334 = vpow2.f32 %v1150_v57 }
 0x297   :  { %1336 = vtanh.f32 %v998_v59 }
 0x29f   :  { %v1333_v60 = vpop.eup %1332 }
 0x2a0   :  { %v1007_v61 = vadd.f32 1.0, %v1333_v60  ;;  %v1335_v62 = vpop.eup %1334 }
 0x2a1   :  { %v1014_v63 = vadd.f32 1.0, %v1335_v62  ;;  %v1337_v0 = vpop.eup %1336 }
 0x2a2   :  { %1338 = vrcp.f32 %v1007_v61 }
 0x2a3   :  { %1340 = vrcp.f32 %v1014_v63 }
 0x2ac   :  { %v1339_v2 = vpop.eup %1338 }
 0x2ad   :  { %v1017_v3 = vmul.f32 %v1339_v2, %v1337_v0  ;;  %v1341_v4 = vpop.eup %1340 }
 0x2af   :  { %1342 = vtanh.f32 %v1017_v3 }
 0x2b9   :  { %v1343_v5 = vpop.eup %1342 }
 0x2ba   :  { %v1019_v6 = vmul.f32 %v1343_v5, %v1341_v4 }
 0x2bc   :  { %1020 = vst [vmem:[#allocation14] sm:$0xff] %v1019_v6 }
 0x2bd   :  { %1443 = shalt.err (!%p1440_p10)
}
 0x2be   :  { %s1444_s27 = scalar_lea.hbm %s1656_s8, 256 }
 0x2bf   :  { %p1445_p11 = scmp.ne.s32.totalorder %s1656_s8, %s1444_s27  ;;  %p1448_p12 = scmp.lt.u32.totalorder %s1444_s27, %s1656_s8 }
 0x2c1   :  { %p1450_p13 = pnand %p1448_p12, %p1445_p11 }
 0x2c3   :  { %1453 = shalt.err (!%p1450_p13)
}
 0x2c4   :  { %1032 = dma.vmem_to_hbm [thread:$0]  %s1030_s20, 256, %s1656_s8, [#allocation8]  }
 0x2c5   :  { %1464 = dma.done.wait [#allocation8], 256  }
 0x2c6   :  { %1465 = vsyncadd [#allocation8], 4294967040 }
 0x2c7   :  { %1036 = vsyncpa [#allocation7], 1 }
 0x2c8   :  { %1037 = vsyncpa [#allocation10], 1 }
 0x2c9   :  { %1038 = vsyncpa [#allocation13], 1 }
 0x2ca   :  { %1039 = vsyncpa [#allocation8], 1 }

</bundles_post_ra>
